<compile_context>
chip_gen: v7x
topology: tpu7x:2x2x1
jax: 0.10.0
libtpu: 0.0.40
codegen_flags: <defaults>
</compile_context>

<pallas_src>
import jax
import jax.numpy as jnp
from jax.experimental import pallas as pl
from jax.experimental.pallas import tpu as pltpu

NUM_CLASSES = 10   # CIFAR-10 classes / KMeans centroids
PROJ_DIM = 60      # projector[:, :60] in the reference
RHS_WIDTH = 128    # fused RHS width padded to one full lane group

# VMEM budget for the double-buffered f32 x tile (leaves room for RHS copies
# and epilogue intermediates on every chip generation, incl. v7x's 64 MiB).
_X_TILE_VMEM_BUDGET = 12 * 1024 * 1024


def nnmix_kernel(x_ref, rhs_ref, off_ref, cent_t_ref, b2_ref, out_ref):
    # x_ref:      (TB, D)        f32  flattened input tile (cast to bf16 here)
    # rhs_ref:    (D, 128)       bf16 [proj/norm | W | 0-pad]
    # off_ref:    (1, 128)       f32  [-mean*(1/norm)@proj | bias | 0-pad]
    # cent_t_ref: (K, NC)        f32  centroids^T
    # b2_ref:     (1, NC)        f32  ||centroids||^2
    x_bf = x_ref[...].astype(jnp.bfloat16)           # in-VMEM cast (VPU, hidden)
    # One fused MXU matmul feeds both branches (f32 accumulation).
    combined = jnp.dot(x_bf, rhs_ref[...],
                       preferred_element_type=jnp.float32) + off_ref[...]
    proj_x = combined[:, :PROJ_DIM]                              # (TB, K)
    logits = combined[:, PROJ_DIM:PROJ_DIM + NUM_CLASSES]        # (TB, NC)

    # ---- KMeans branch: cdist + softmax (all f32) -----------------------
    ab = jnp.dot(proj_x, cent_t_ref[...],
                 preferred_element_type=jnp.float32)             # (TB, NC)
    a2 = jnp.sum(proj_x * proj_x, axis=1, keepdims=True)         # (TB, 1)
    d2 = jnp.maximum(a2 + b2_ref[...] - 2.0 * ab, 0.0)
    cdist = jnp.sqrt(d2)                                         # (TB, NC)

    s = -cdist
    s = s - jnp.max(s, axis=1, keepdims=True)
    e = jnp.exp(s)
    knn_logits = e * pl.reciprocal(jnp.sum(e, axis=1, keepdims=True),
                                   approx=True)                  # (TB, NC)

    out_ref[...] = logits * knn_logits


def nnmix_means_forward(x, mean, norm, projector, centroids, w, b):
    """x: (B, C, H, W) float32 (NCHW). Returns (B, NUM_CLASSES) float32."""
    B = x.shape[0]
    x2 = x.reshape(B, -1).astype(jnp.float32)                    # (B, D), no copy
    D = x2.shape[1]
    K = projector.shape[1]
    NC = centroids.shape[0]

    # ---- host-side algebraic folding (constant per call) ----------------
    # Assumes norm has no zeros (same implicit assumption as the reference
    # runtime divide).
    inv_norm = 1.0 / norm.astype(jnp.float32)                    # (D,)
    proj_n = projector.astype(jnp.float32) * inv_norm[:, None]   # (D, K)
    proj_off = -jnp.asarray(mean, jnp.float32) * (
        inv_norm @ projector.astype(jnp.float32))                # (K,)

    rhs = jnp.zeros((D, RHS_WIDTH), jnp.float32)
    rhs = rhs.at[:, :K].set(proj_n)
    rhs = rhs.at[:, K:K + NC].set(w.astype(jnp.float32))
    rhs_bf = rhs.astype(jnp.bfloat16)                            # tiny cast
    off = jnp.zeros((1, RHS_WIDTH), jnp.float32)
    off = off.at[0, :K].set(proj_off)
    off = off.at[0, K:K + NC].set(b.astype(jnp.float32))

    cent_t = centroids.T.astype(jnp.float32)                     # (K, NC)
    b2 = jnp.sum(centroids.astype(jnp.float32) ** 2,
                 axis=1).reshape(1, NC)                          # (1, NC)

    # ---- batch tiling ----------------------------------------------------
    row_bytes = 4 * D                                            # f32 row
    tb_cap = max(8, (_X_TILE_VMEM_BUDGET // (2 * row_bytes)) // 8 * 8)
    TB = min(512, tb_cap, ((B + 7) // 8) * 8)                    # multiple of 8
    B_pad = ((B + TB - 1) // TB) * TB
    if B_pad != B:
        x2 = jnp.pad(x2, ((0, B_pad - B), (0, 0)))

    out = pl.pallas_call(
        nnmix_kernel,
        out_shape=jax.ShapeDtypeStruct((B_pad, NC), jnp.float32),
        grid=(B_pad // TB,),
        in_specs=[
            pl.BlockSpec((TB, D), lambda i: (i, 0)),             # x tile (f32)
            pl.BlockSpec((D, RHS_WIDTH), lambda i: (0, 0)),      # fused RHS
            pl.BlockSpec((1, RHS_WIDTH), lambda i: (0, 0)),      # fused offset
            pl.BlockSpec((K, NC), lambda i: (0, 0)),             # centroids^T
            pl.BlockSpec((1, NC), lambda i: (0, 0)),             # ||centroids||^2
        ],
        out_specs=pl.BlockSpec((TB, NC), lambda i: (i, 0)),
        compiler_params=pltpu.CompilerParams(
            dimension_semantics=("parallel",),
            vmem_limit_bytes=48 * 1024 * 1024),
    )(x2, rhs_bf, off, cent_t, b2)

    return out[:B]


def reference_forward(x, mean, norm, projector, centroids, w, b):
    x2 = x.reshape(x.shape[0], -1).astype(jnp.float32)
    xn = (x2 - mean) / norm
    px = xn @ projector
    diff = px[:, None, :] - centroids[None, :, :]
    cdist = jnp.sqrt(jnp.maximum(jnp.sum(diff * diff, axis=-1), 0.0))
    knn = jax.nn.softmax(-cdist, axis=1)
    logits = x2 @ w + b[None, :]
    return logits * knn


if __name__ == "__main__":
    # Small CIFAR-like shapes.
    B, C, H, W = 2, 3, 16, 16
    D = C * H * W           # 768

    key = jax.random.PRNGKey(0)
    kx, kn, kp, kc, kw, kb = jax.random.split(key, 6)

    x = jax.random.uniform(kx, (B, C, H, W), jnp.float32)            # NCHW
    mean = jnp.float32(0.47)                                         # scalar mean
    norm = jax.random.uniform(kn, (D,), jnp.float32, 0.5, 1.5)        # per-feature norm
    projector = jax.random.normal(kp, (D, PROJ_DIM), jnp.float32) / jnp.sqrt(D)
    centroids = jax.random.normal(kc, (NUM_CLASSES, PROJ_DIM), jnp.float32) * 0.1
    w = jax.random.normal(kw, (D, NUM_CLASSES), jnp.float32) / jnp.sqrt(D)
    b = jax.random.normal(kb, (NUM_CLASSES,), jnp.float32) * 0.01

    out = nnmix_means_forward(x, mean, norm, projector, centroids, w, b)
    out = jax.block_until_ready(out)

    ref = reference_forward(x, mean, norm, projector, centroids, w, b)
    assert out.shape == (B, NUM_CLASSES)
    assert bool(jnp.all(jnp.isfinite(out)))
    assert jnp.allclose(out, ref, rtol=5e-2, atol=5e-3), (out, ref)

    print("KERNEL_OK")
</pallas_src>

<mosaic_0001>
module attributes {stable_mosaic.version = 11 : i64} {
  func.func @nnmix_kernel(%arg0: i32, %arg1: memref<8x768xf32, #tpu.memory_space<vmem>>, %arg2: memref<768x128xbf16, #tpu.memory_space<vmem>>, %arg3: memref<1x128xf32, #tpu.memory_space<vmem>>, %arg4: memref<60x10xf32, #tpu.memory_space<vmem>>, %arg5: memref<1x10xf32, #tpu.memory_space<vmem>>, %arg6: memref<8x10xf32, #tpu.memory_space<vmem>>) attributes {dimension_semantics = [#tpu.dimension_semantics<parallel>], iteration_bounds = array<i64: 1>, scalar_prefetch = 0 : i64, scratch_operands = 0 : i64, tpu.core_type = #tpu.core_type<tc>, window_params = [{transform_indices = @transform_0, window_bounds = array<i64: 8, 768>}, {pipeline_mode = #tpu.pipeline_mode<synchronous>, transform_indices = @transform_1, window_bounds = array<i64: 768, 128>}, {pipeline_mode = #tpu.pipeline_mode<synchronous>, transform_indices = @transform_2, window_bounds = array<i64: 1, 128>}, {pipeline_mode = #tpu.pipeline_mode<synchronous>, transform_indices = @transform_3, window_bounds = array<i64: 60, 10>}, {pipeline_mode = #tpu.pipeline_mode<synchronous>, transform_indices = @transform_4, window_bounds = array<i64: 1, 10>}, {transform_indices = @transform_5, window_bounds = array<i64: 8, 10>}]} {
    %c0 = arith.constant 0 : index
    %c0_0 = arith.constant 0 : index
    %0 = vector.load %arg1[%c0, %c0_0] : memref<8x768xf32, #tpu.memory_space<vmem>>, vector<8x768xf32>
    %1 = arith.truncf %0 : vector<8x768xf32> to vector<8x768xbf16>
    %c0_1 = arith.constant 0 : index
    %c0_2 = arith.constant 0 : index
    %2 = vector.load %arg2[%c0_1, %c0_2] : memref<768x128xbf16, #tpu.memory_space<vmem>>, vector<768x128xbf16>
    %cst = arith.constant dense<0.000000e+00> : vector<8x128xf32>
    %3 = tpu.matmul %1, %2, %cst {dimension_numbers = #tpu.dot_dimension_numbers<[1], [0], [0], [1], [0, 0, 1, 1], [], []>} : vector<8x768xbf16>, vector<768x128xbf16>, vector<8x128xf32> -> vector<8x128xf32>
    %c0_3 = arith.constant 0 : index
    %c0_4 = arith.constant 0 : index
    %4 = vector.load %arg3[%c0_3, %c0_4] : memref<1x128xf32, #tpu.memory_space<vmem>>, vector<1x128xf32>
    %5 = vector.broadcast %4 : vector<1x128xf32> to vector<8x128xf32>
    %6 = arith.addf %3, %5 : vector<8x128xf32>
    %7 = vector.extract_strided_slice %6 {offsets = [0, 0], sizes = [8, 60], strides = [1, 1]} : vector<8x128xf32> to vector<8x60xf32>
    %8 = vector.extract_strided_slice %6 {offsets = [0, 60], sizes = [8, 10], strides = [1, 1]} : vector<8x128xf32> to vector<8x10xf32>
    %c0_5 = arith.constant 0 : index
    %c0_6 = arith.constant 0 : index
    %9 = vector.load %arg4[%c0_5, %c0_6] : memref<60x10xf32, #tpu.memory_space<vmem>>, vector<60x10xf32>
    %cst_7 = arith.constant dense<0.000000e+00> : vector<8x10xf32>
    %10 = tpu.matmul %7, %9, %cst_7 {dimension_numbers = #tpu.dot_dimension_numbers<[1], [0], [0], [1], [0, 0, 1, 1], [], []>} : vector<8x60xf32>, vector<60x10xf32>, vector<8x10xf32> -> vector<8x10xf32>
    %11 = arith.mulf %7, %7 : vector<8x60xf32>
    %cst_8 = arith.constant dense<0.000000e+00> : vector<8xf32>
    %12 = vector.multi_reduction <add>, %11, %cst_8 [1] : vector<8x60xf32> to vector<8xf32>
    %13 = vector.shape_cast %12 : vector<8xf32> to vector<8x1xf32>
    %c0_9 = arith.constant 0 : index
    %c0_10 = arith.constant 0 : index
    %14 = vector.load %arg5[%c0_9, %c0_10] : memref<1x10xf32, #tpu.memory_space<vmem>>, vector<1x10xf32>
    %15 = vector.broadcast %13 : vector<8x1xf32> to vector<8x10xf32>
    %16 = vector.broadcast %14 : vector<1x10xf32> to vector<8x10xf32>
    %17 = arith.addf %15, %16 : vector<8x10xf32>
    %cst_11 = arith.constant 2.000000e+00 : f32
    %18 = vector.broadcast %cst_11 : f32 to vector<8x10xf32>
    %19 = arith.mulf %18, %10 : vector<8x10xf32>
    %20 = arith.subf %17, %19 : vector<8x10xf32>
    %cst_12 = arith.constant 0.000000e+00 : f32
    %21 = vector.broadcast %cst_12 : f32 to vector<8x10xf32>
    %22 = arith.maximumf %20, %21 : vector<8x10xf32>
    %23 = math.sqrt %22 : vector<8x10xf32>
    %cst_13 = arith.constant 0.000000e+00 : f32
    %24 = vector.broadcast %cst_13 : f32 to vector<8x10xf32>
    %25 = arith.subf %24, %23 : vector<8x10xf32>
    %cst_14 = arith.constant dense<0xFF800000> : vector<8xf32>
    %26 = vector.multi_reduction <maximumf>, %25, %cst_14 [1] : vector<8x10xf32> to vector<8xf32>
    %27 = vector.shape_cast %26 : vector<8xf32> to vector<8x1xf32>
    %28 = vector.broadcast %27 : vector<8x1xf32> to vector<8x10xf32>
    %29 = arith.subf %25, %28 : vector<8x10xf32>
    %30 = math.exp %29 : vector<8x10xf32>
    %cst_15 = arith.constant dense<0.000000e+00> : vector<8xf32>
    %31 = vector.multi_reduction <add>, %30, %cst_15 [1] : vector<8x10xf32> to vector<8xf32>
    %32 = vector.shape_cast %31 : vector<8xf32> to vector<8x1xf32>
    %33 = tpu.reciprocal %32 {approx = true} : vector<8x1xf32> -> vector<8x1xf32>
    %34 = vector.broadcast %33 : vector<8x1xf32> to vector<8x10xf32>
    %35 = arith.mulf %30, %34 : vector<8x10xf32>
    %36 = arith.mulf %8, %35 : vector<8x10xf32>
    %c0_16 = arith.constant 0 : index
    %c0_17 = arith.constant 0 : index
    %37 = vector.load %arg6[%c0_16, %c0_17] : memref<8x10xf32, #tpu.memory_space<vmem>>, vector<8x10xf32>
    tpu.vector_store %arg6[%c0_16, %c0_17], %36 {strides = array<i32>} : memref<8x10xf32, #tpu.memory_space<vmem>>, vector<8x10xf32>,
    return
  }
  func.func @transform_0(%arg0: i32) -> (i32, i32) {
    %c0_i32 = arith.constant 0 : i32
    %c0_i32_0 = arith.constant 0 : i32
    return %arg0, %c0_i32 : i32, i32
  }
  func.func @transform_1(%arg0: i32) -> (i32, i32) {
    %c0_i32 = arith.constant 0 : i32
    %c0_i32_0 = arith.constant 0 : i32
    %c0_i32_1 = arith.constant 0 : i32
    return %c0_i32, %c0_i32_0 : i32, i32
  }
  func.func @transform_2(%arg0: i32) -> (i32, i32) {
    %c0_i32 = arith.constant 0 : i32
    %c0_i32_0 = arith.constant 0 : i32
    %c0_i32_1 = arith.constant 0 : i32
    return %c0_i32, %c0_i32_0 : i32, i32
  }
  func.func @transform_3(%arg0: i32) -> (i32, i32) {
    %c0_i32 = arith.constant 0 : i32
    %c0_i32_0 = arith.constant 0 : i32
    %c0_i32_1 = arith.constant 0 : i32
    return %c0_i32, %c0_i32_0 : i32, i32
  }
  func.func @transform_4(%arg0: i32) -> (i32, i32) {
    %c0_i32 = arith.constant 0 : i32
    %c0_i32_0 = arith.constant 0 : i32
    %c0_i32_1 = arith.constant 0 : i32
    return %c0_i32, %c0_i32_0 : i32, i32
  }
  func.func @transform_5(%arg0: i32) -> (i32, i32) {
    %c0_i32 = arith.constant 0 : i32
    %c0_i32_0 = arith.constant 0 : i32
    return %arg0, %c0_i32 : i32, i32
  }
}

</mosaic_0001>

<bundles_post_ra>
// kernel: tpu_custom_call.1
= control target key start
LH: loop header
LB: loop body
LE: loop exit
PB: predicated region body
PF: predicated region fallthrough
CT: control target
= control target key end

     0   :  { %10 = vsyncpa [#allocation3], 0  ;;  %s1091_s0 = inlined_call_operand.vmem [shape: f32[8,768], index: 0, kind: input, shape index: {}]   ;;  %s1092_s1 = inlined_call_operand.hbm [shape: bf16[768,128], index: 1, kind: input, shape index: {}]   ;;  %s1093_s2 = inlined_call_operand.vmem [shape: f32[1,128], index: 2, kind: input, shape index: {}]   ;;  %s1094_s3 = inlined_call_operand.vmem [shape: f32[60,10], index: 3, kind: input, shape index: {}]   ;;  %s1095_s4 = inlined_call_operand.vmem [shape: f32[1,10], index: 4, kind: input, shape index: {}]   ;;  %s1096_s5 = inlined_call_operand.hbm [shape: f32[8,10], index: 5, kind: output, shape index: {}]  }
   0x1   :  { %11 = vsyncpa [#allocation4], 0  ;;  %s976_s18 = smov [#allocation2]   ;;  %s928_s22 = scalar_lea.hbm %s1092_s1, 6144 }
   0x2   :  { %s19_s19 = sshll.u32 %s976_s18, 4  ;;  %p929_p0 = scmp.ne.s32.totalorder %s1092_s1, %s928_s22  ;;  %s20_s19 = int_to_ptr.vmem [resolvable:$true] %s19_s19 }
   0x3   :  { %p932_p1 = scmp.lt.u32.totalorder %s928_s22, %s1092_s1 }
   0x5   :  { %p934_p2 = pnand %p932_p1, %p929_p0 }
   0x7   :  { %937 = shalt.err (!%p934_p2)
}
   0x8   :  { %s938_s27 = scalar_lea.vmem %s20_s19, 6144  ;;  %p943_p4 = scmp.lt.s32.totalorder %s20_s19, %s20_s19 }
   0x9   :  { %p939_p3 = scmp.ne.s32.totalorder %s20_s19, %s938_s27  ;;  %p944_p5 = scmp.lt.s32.totalorder %s938_s27, %s938_s27 }
   0xb   :  { %p945_p6 = por %p944_p5, %p943_p4 }
   0xd   :  { %p946_p7 = pnand %p945_p6, %p939_p3 }
   0xf   :  { %949 = shalt.err (!%p946_p7)
}
  0x10   :  { %s977_s28 = smov 64   ;;  %s978_s29 = smov 4  }
  0x11   :  { %25 = dma.hbm_to_vmem [thread:$0]  %s1092_s1, 6144, %s20_s19, [#allocation3], %s977_s28, %s977_s28, %s978_s29  }
  0x12   :  { %972 = dma.done.wait [#allocation3], 6144  }
  0x13   :  { %973 = vsyncadd [#allocation3], 4294961152  ;;  %v874_v0 = vld [vmem:[#allocation2 + $0x40] sm:$0xff]   ;;  %v878_v4 = vld [vmem:[#allocation2 + $0x48] sm:$0xff]   ;;  %v979_v63 = vmov 0.0|0.0   ;;  %vm571_vm0 = vcmask 1043456  }
  0x14   :  { %v875_v1 = vld [vmem:[#allocation2] sm:$0xff]   ;;  %757 = vmatprep.subr.bf16.mxu0 %v874_v0  ;;  %v879_v5 = vld [vmem:[#allocation2 + $0x8] sm:$0xff]   ;;  %v882_v8 = vld [vmem:[#allocation2 + $0x50] sm:$0xff]   ;;  %vm980_vm1 = vmmov 1   ;;  %vm981_vm3 = vmmov 0   ;;  %vm567_vm4 = vcmask 490496  }
  0x15   :  { %v876_v2 = vld [vmem:[#allocation2 + $0xc0] sm:$0xff]   ;;  %758 = vmatpush3.bf16.msra.mxu0 %v875_v1  ;;  %v880_v6 = vld [vmem:[#allocation2 + $0xc8] sm:$0xff]   ;;  %v883_v9 = vld [vmem:[#allocation2 + $0x10] sm:$0xff]   ;;  %vm668_vm7 = vcmask 80896   ;;  %s984_s9 = smov 68   ;;  %s985_s10 = smov [#allocation5]  }
  0x16   :  { %v877_v3 = vld [vmem:[#allocation2 + $0x80] sm:$0xff]   ;;  %779 = vmatprep.subr.bf16.mxu1 %v876_v2  ;;  %759 = vmatprep.subr.bf16.mxu0 %v878_v4  ;;  %v881_v7 = vld [vmem:[#allocation2 + $0x88] sm:$0xff]   ;;  %v884_v10 = vld [vmem:[#allocation2 + $0xd0] sm:$0xff]   ;;  %s696_s11 = sshll.u32 %s985_s10, 4  ;;  %s697_s11 = int_to_ptr.vmem [resolvable:$true] %s696_s11 }
  0x17   :  { %780 = vmatpush3.bf16.msra.mxu1 %v877_v3  ;;  %v885_v11 = vld [vmem:[#allocation2 + $0x90] sm:$0xff]   ;;  %v886_v12 = vld [vmem:[#allocation2 + $0x58] sm:$0xff]   ;;  %v890_v16 = vld [vmem:[#allocation2 + $0x60] sm:$0xff]   ;;  %s950_s12 = scalar_lea.vmem %s697_s11, 128  ;;  %p955_p9 = scmp.lt.s32.totalorder %s697_s11, %s697_s11 }
  0x18   :  { %781 = vmatprep.subr.bf16.mxu1 %v880_v6  ;;  %v887_v13 = vld [vmem:[#allocation2 + $0x18] sm:$0xff]   ;;  %v891_v17 = vld [vmem:[#allocation2 + $0x20] sm:$0xff]   ;;  %v894_v20 = vld [vmem:[#allocation2 + $0x68] sm:$0xff]   ;;  %p951_p8 = scmp.ne.s32.totalorder %s697_s11, %s950_s12  ;;  %p956_p10 = scmp.lt.s32.totalorder %s950_s12, %s950_s12 }
  0x19   :  { %760 = vmatpush3.bf16.msra.mxu0 %v879_v5  ;;  %v888_v14 = vld [vmem:[#allocation2 + $0xd8] sm:$0xff]   ;;  %v892_v18 = vld [vmem:[#allocation2 + $0xe0] sm:$0xff]   ;;  %v895_v21 = vld [vmem:[#allocation2 + $0x28] sm:$0xff]  }
  0x1a   :  { %761 = vmatprep.subr.bf16.mxu0 %v882_v8  ;;  %v889_v15 = vld [vmem:[#allocation2 + $0x98] sm:$0xff]   ;;  %v893_v19 = vld [vmem:[#allocation2 + $0xa0] sm:$0xff]   ;;  %v896_v22 = vld [vmem:[#allocation2 + $0xe8] sm:$0xff]   ;;  %p957_p11 = por %p956_p10, %p955_p9 }
  0x1b   :  { %782 = vmatpush3.bf16.msra.mxu1 %v881_v7  ;;  %v897_v23 = vld [vmem:[#allocation2 + $0xa8] sm:$0xff]   ;;  %v898_v24 = vld [vmem:[#allocation2 + $0x70] sm:$0xff]   ;;  %v902_v28 = vld [vmem:[#allocation2 + $0x78] sm:$0xff]  }
  0x1c   :  { %783 = vmatprep.subr.bf16.mxu1 %v884_v10  ;;  %v899_v25 = vld [vmem:[#allocation2 + $0x30] sm:$0xff]   ;;  %v903_v29 = vld [vmem:[#allocation2 + $0x38] sm:$0xff]   ;;  %v37_v31 = vld [vmem:[%s1091_s0 + $0x8] sm:$0xff]  ;;  %p958_p12 = pnand %p957_p11, %p951_p8 }
  0x1d   :  { %762 = vmatpush3.bf16.msra.mxu0 %v883_v9  ;;  %v900_v26 = vld [vmem:[#allocation2 + $0xf0] sm:$0xff]   ;;  %v904_v30 = vld [vmem:[#allocation2 + $0xf8] sm:$0xff]   ;;  %v43_v32 = vpack.c.bf16 %v37_v31, %v37_v31  ;;  %v36_v34 = vld [vmem:[%s1091_s0] sm:$0xff]  ;;  %v982_v9 = vmov 0.0  }
  0x1e   :  { %763 = vmatprep.subr.bf16.mxu0 %v886_v12  ;;  %v901_v27 = vld [vmem:[#allocation2 + $0xb0] sm:$0xff]   ;;  %v905_v33 = vld [vmem:[#allocation2 + $0xb8] sm:$0xff]   ;;  %v42_v35 = vpack.c.bf16 %v36_v34, %v36_v34  ;;  %v906_v36 = vld [vmem:[#allocation2 + $0x140] sm:$0xff]  }
  0x1f   :  { %784 = vmatpush3.bf16.msra.mxu1 %v885_v11  ;;  %v39_v37 = vld [vmem:[%s1091_s0 + $0x18] sm:$0xff]  ;;  %471 = vmatprep.mubr.bf16.mxu0 %v43_v32  ;;  %v907_v39 = vld [vmem:[#allocation2 + $0x100] sm:$0xff]   ;;  %v38_v40 = vld [vmem:[%s1091_s0 + $0x10] sm:$0xff] }
  0x20   :  { %785 = vmatprep.subr.bf16.mxu1 %v888_v14  ;;  %v45_v38 = vpack.c.bf16 %v39_v37, %v39_v37  ;;  %v44_v41 = vpack.c.bf16 %v38_v40, %v38_v40  ;;  %v908_v42 = vld [vmem:[#allocation2 + $0x148] sm:$0xff]   ;;  %v910_v44 = vld [vmem:[#allocation2 + $0x150] sm:$0xff]   ;;  %v912_v46 = vld [vmem:[#allocation2 + $0x158] sm:$0xff]  }
  0x21   :  { %764 = vmatpush3.bf16.msra.mxu0 %v887_v13  ;;  %v909_v43 = vld [vmem:[#allocation2 + $0x108] sm:$0xff]   ;;  %v911_v45 = vld [vmem:[#allocation2 + $0x110] sm:$0xff]   ;;  %v913_v47 = vld [vmem:[#allocation2 + $0x118] sm:$0xff]  }
  0x22   :  { %765 = vmatprep.subr.bf16.mxu0 %v890_v16  ;;  %511 = vmatprep.mubr.bf16.mxu1 %v45_v38  ;;  %v914_v48 = vld [vmem:[#allocation2 + $0x160] sm:$0xff]   ;;  %v916_v50 = vld [vmem:[#allocation2 + $0x168] sm:$0xff]   ;;  %v918_v54 = vld [vmem:[#allocation2 + $0x170] sm:$0xff]  }
  0x23   :  { %786 = vmatpush3.bf16.msra.mxu1 %v889_v15  ;;  %v915_v49 = vld [vmem:[#allocation2 + $0x120] sm:$0xff]   ;;  %v41_v51 = vld [vmem:[%s1091_s0 + $0x28] sm:$0xff]  ;;  %v919_v55 = vld [vmem:[#allocation2 + $0x130] sm:$0xff]  }
  0x24   :  { %787 = vmatprep.subr.bf16.mxu1 %v892_v18  ;;  %v47_v52 = vpack.c.bf16 %v41_v51, %v41_v51  ;;  %v917_v53 = vld [vmem:[#allocation2 + $0x128] sm:$0xff]   ;;  %v920_v56 = vld [vmem:[#allocation2 + $0x178] sm:$0xff]   ;;  %v40_v58 = vld [vmem:[%s1091_s0 + $0x20] sm:$0xff] }
  0x25   :  { %766 = vmatpush3.bf16.msra.mxu0 %v891_v17  ;;  %v921_v57 = vld [vmem:[#allocation2 + $0x138] sm:$0xff]   ;;  %v46_v59 = vpack.c.bf16 %v40_v58, %v40_v58  ;;  %v559_v60 = vld [vmem:[%s1094_s3] sm:$0xff]  ;;  %v560_v61 = vld [vmem:[%s1094_s3 + $0x8] sm:$0xff] }
  0x26   :  { %767 = vmatprep.subr.bf16.mxu0 %v894_v20  ;;  %v561_v62 = vld [vmem:[%s1094_s3 + $0x10] sm:$0xff]  ;;  %v852_v0 = vpack.c.bf16 %v560_v61, %v559_v60  ;;  %v562_v1 = vld [vmem:[%s1094_s3 + $0x18] sm:$0xff]  ;;  %v563_v3 = vld [vmem:[%s1094_s3 + $0x20] sm:$0xff] }
  0x27   :  { %788 = vmatpush3.bf16.msra.mxu1 %v893_v19  ;;  %v855_v2 = vpack.c.bf16 %v562_v1, %v561_v62  ;;  %v564_v4 = vld [vmem:[%s1094_s3 + $0x28] sm:$0xff]  ;;  %v565_v6 = vld [vmem:[%s1094_s3 + $0x30] sm:$0xff]  ;;  %v566_v7 = vld [vmem:[%s1094_s3 + $0x38] sm:$0xf] }
  0x28   :  { %789 = vmatprep.subr.bf16.mxu1 %v896_v22  ;;  %v858_v5 = vpack.c.bf16 %v564_v4, %v563_v3  ;;  %v861_v8 = vpack.c.bf16 %v566_v7, %v565_v6  ;;  %vm862_vm2 = vmpackc.low %vm571_vm0, %vm980_vm1  ;;  %v705_v11 = vld [vmem:[%s1093_s2] ss:$0 sm:$0xff] }
  0x29   :  { %768 = vmatpush3.bf16.msra.mxu0 %v895_v21  ;;  %v756_v31 = vld [vmem:[%s1095_s4] ss:$0 sm:$0xff]  ;;  %s983_s4 = smov 60  }
  0x2a   :  { %769 = vmatprep.subr.bf16.mxu0 %v898_v24 }
  0x2b   :  { %790 = vmatpush3.bf16.msra.mxu1 %v897_v23 }
  0x2c   :  { %791 = vmatprep.subr.bf16.mxu1 %v900_v26 }
  0x2d   :  { %770 = vmatpush3.bf16.msra.mxu0 %v899_v25 }
  0x2e   :  { %771 = vmatprep.subr.bf16.mxu0 %v902_v28 }
  0x2f   :  { %792 = vmatpush3.bf16.msra.mxu1 %v901_v27 }
  0x30   :  { %793 = vmatprep.subr.bf16.mxu1 %v904_v30 }
  0x31   :  { %772 = vmatpush3.bf16.msra.mxu0 %v903_v29 }
  0x32   :  { %801 = vmatprep.subr.bf16.mxu0 %v906_v36 }
  0x33   :  { %794 = vmatpush3.bf16.msra.mxu1 %v905_v33 }
  0x34   :  { %472 = vmatmul.mubr.bf16.vlgmr.msra.gmra.mrb[0].mxu0 %v42_v35  ;;  %851 = vmatprep.subr.bf16.mxu1 %v979_v63 }
  0x35   :  { %802 = vmatpush3.bf16.msra.mxu0 %v907_v39  ;;  %551 = vmatprep.mubr.bf16.mxu0 %v47_v52 }
  0x36   :  { %512 = vmatmul.mubr.bf16.vlgmr.msra.gmra.mrb[0].mxu1 %v44_v41  ;;  %803 = vmatprep.subr.bf16.mxu0 %v908_v42 }
  0x37   :  { %853 = vmatpush3.bf16.msra.mxu1 %v852_v0  ;;  %848 = vmatprep.mubr.msk.f32.mxu1 %vm981_vm3, %v982_v9 }
  0x38   :  { %854 = vmatprep.subr.bf16.mxu1 %v979_v63 }
  0x39   :  { %804 = vmatpush3.bf16.msra.mxu0 %v909_v43 }
  0x3a   :  { %805 = vmatprep.subr.bf16.mxu0 %v910_v44 }
  0x3b   :  { %856 = vmatpush3.bf16.msra.mxu1 %v855_v2 }
  0x3c   :  { %857 = vmatprep.subr.bf16.mxu1 %v979_v63 }
  0x3d   :  { %806 = vmatpush3.bf16.msra.mxu0 %v911_v45 }
  0x3e   :  { %807 = vmatprep.subr.bf16.mxu0 %v912_v46 }
  0x3f   :  { %859 = vmatpush3.bf16.msra.mxu1 %v858_v5 }
  0x40   :  { %860 = vmatprep.subr.bf16.mxu1 %v979_v63 }
  0x41   :  { %808 = vmatpush3.bf16.msra.mxu0 %v913_v47 }
  0x42   :  { %809 = vmatprep.subr.bf16.mxu0 %v914_v48 }
  0x43   :  { %863 = vmatpush3.bf16.msk.msra.mxu1 %vm862_vm2, %v861_v8 }
  0x45   :  { %810 = vmatpush3.bf16.msra.mxu0 %v915_v49 }
  0x46   :  { %811 = vmatprep.subr.bf16.mxu0 %v916_v50 }
  0x49   :  { %812 = vmatpush3.bf16.msra.mxu0 %v917_v53 }
  0x4a   :  { %813 = vmatprep.subr.bf16.mxu0 %v918_v54 }
  0x4d   :  { %814 = vmatpush3.bf16.msra.mxu0 %v919_v55 }
  0x4e   :  { %815 = vmatprep.subr.bf16.mxu0 %v920_v56 }
  0x51   :  { %816 = vmatpush3.bf16.msra.mxu0 %v921_v57 }
  0x54   :  { %552 = vmatmul.mubr.bf16.vlgmr.msra.gmra.mrb[4].mxu0 %v46_v59 }
 0x107   :  { %v773_v10 = vpop.f32.mrb[0].mxu0 }
 0x108   :  { %v774_v12 = vpop.f32.mrb[1].mxu0 }
 0x109   :  { %v775_v13 = vadd.f32 %v774_v12, %v773_v10  ;;  %v776_v14 = vpop.f32.mrb[2].mxu0  ;;  %v795_v15 = vpop.f32.mrb[0].mxu1 }
 0x10a   :  { %v777_v16 = vpop.f32.mrb[3].mxu0  ;;  %v796_v18 = vpop.f32.mrb[1].mxu1 }
 0x10b   :  { %v474_v17 = vadd.f32 %v775_v13, %v705_v11  ;;  %v797_v19 = vadd.f32 %v796_v18, %v795_v15  ;;  %v798_v20 = vpop.f32.mrb[2].mxu1 }
 0x10c   :  { %v799_v21 = vpop.f32.mrb[3].mxu1 }
 0x10d   :  { %v514_v22 = vadd.f32 %v797_v19, %v474_v17 }
 0x127   :  { %v817_v23 = vpop.f32.mrb[4].mxu0 }
 0x128   :  { %v818_v24 = vpop.f32.mrb[5].mxu0 }
 0x129   :  { %v819_v25 = vadd.f32 %v818_v24, %v817_v23  ;;  %v820_v26 = vpop.f32.mrb[6].mxu0 }
 0x12a   :  { %v821_v27 = vpop.f32.mrb[7].mxu0 }
 0x12b   :  { %v554_v28 = vadd.f32 %v819_v25, %v514_v22 }
 0x12d   :  { %849 = vmatmul.mubr.msk.f32.vlgmr.msra.gmra.mrb[4].mxu1 %vm567_vm4, %v554_v28  ;;  %v645_v29 = vmul.f32 %v554_v28, %v554_v28 }
 0x12f   :  { %v646_v30 = vsel %vm567_vm4, %v645_v29, 0.0 }
 0x130   :  { %647 = vadd.xlane.f32.xlu0 %v646_v30 }
 0x1bd   :  { %v648_v32 = vpop.xlane.xlu0 %647 }
 0x1be   :  { %v656_v34 = vadd.f32 %v756_v31, %v648_v32 }
 0x200   :  { %v641_v33 = vpop.f32.mrb[4].mxu1 }
 0x201   :  { %v657_v35 = vmul.f32 2.0, %v641_v33  ;;  %v850_v36 = vpop.f32.mrb[5].mxu1 }
 0x203   :  { %v658_v37 = vsub.f32 %v656_v34, %v657_v35 }
 0x205   :  { %v659_v38 = vmax.f32 %v658_v37, 0.0 }
 0x207   :  { %922 = vrsqrt.f32 %v659_v38  ;;  %vm662_vm5 = vcmp.eq.f32.partialorder %v659_v38, inf  ;;  %v665_v41 = vand.u32 2147483648, %v659_v38  ;;  %vm664_vm6 = vcmp.eq.f32.partialorder %v659_v38, 0.0 }
 0x211   :  { %v923_v39 = vpop.eup %922 }
 0x212   :  { %v661_v40 = vmul.f32 %v923_v39, %v659_v38 }
 0x214   :  { %v663_v42 = vsel %vm662_vm5, %v659_v38, %v661_v40 }
 0x215   :  { %v666_v43 = vsel %vm664_vm6, %v665_v41, %v663_v42 }
 0x216   :  { %v667_v44 = vsub.f32 0.0, %v666_v43 }
 0x218   :  { %v669_v45 = vsel %vm668_vm7, %v667_v44, -inf }
 0x219   :  { %670 = vmax.xlane.f32.xlu0 %v669_v45 }
 0x2a6   :  { %v671_v46 = vpop.xlane.xlu0 %670 }
 0x2a7   :  { %v672_v47 = vsub.f32 %v667_v44, %v671_v46 }
 0x2a9   :  { %v673_v48 = vmul.f32 1.442695, %v672_v47 }
 0x2ab   :  { %924 = vpow2.f32 %v673_v48 }
 0x2b5   :  { %v925_v49 = vpop.eup %924 }
 0x2b6   :  { %v675_v50 = vsel %vm668_vm7, %v925_v49, 0.0 }
 0x2b7   :  { %676 = vadd.xlane.f32.xlu1 %v675_v50 }
 0x344   :  { %v677_v51 = vpop.xlane.xlu1 %676 }
 0x345   :  { %926 = vrcp.f32 %v677_v51 }
 0x34f   :  { %v927_v52 = vpop.eup %926 }
 0x350   :  { %v679_v53 = vmul.f32 %v927_v52, %v925_v49 }
 0x352   :  { %681 = vrot.lane.b32.xlu1 %v679_v53, %s983_s4 }
 0x3c4   :  { %v682_v54 = vpop.permute.xlu1 %681 }
 0x3c5   :  { %v684_v55 = vmul.f32 %v682_v54, %v554_v28 }
 0x3c7   :  { %686 = vrot.lane.b32.xlu0 %v684_v55, %s984_s9 }
 0x439   :  { %v687_v56 = vpop.permute.xlu0 %686 }
 0x43a   :  { %689 = vst.msk [vmem:[#allocation5] sm:$0xff] %vm668_vm7, %v687_v56 }
 0x43b   :  { %961 = shalt.err (!%p958_p12)
}
 0x43c   :  { %s962_s15 = scalar_lea.hbm %s1096_s5, 128 }
 0x43d   :  { %p963_p13 = scmp.ne.s32.totalorder %s1096_s5, %s962_s15  ;;  %p966_p0 = scmp.lt.u32.totalorder %s962_s15, %s1096_s5 }
 0x43f   :  { %p968_p1 = pnand %p966_p0, %p963_p13 }
 0x441   :  { %971 = shalt.err (!%p968_p1)
}
 0x442   :  { %699 = dma.vmem_to_hbm [thread:$0]  %s697_s11, 128, %s1096_s5, [#allocation4]  }
 0x443   :  { %974 = dma.done.wait [#allocation4], 128  }
 0x444   :  { %975 = vsyncadd [#allocation4], 4294967168 }
 0x445   :  { %703 = vsyncpa [#allocation3], 1 }
 0x446   :  { %704 = vsyncpa [#allocation4], 1 }

</bundles_post_ra>
